<compile_context>
chip_gen: v5e
topology: v5e:2x2
jax: 0.10.0
libtpu: 0.0.40
codegen_flags: <defaults>
</compile_context>

<pallas_src>
import jax
import jax.numpy as jnp
from jax.experimental import pallas as pl
from jax.experimental.pallas import tpu as pltpu

HIDDEN = 128
LANE = 128    # TPU lane width; final layer is padded to a multiple of this.
SUBLANE = 16  # bf16 sublane packing; batch tiles are rounded to this.


def _round_up(v, m):
    return ((v + m - 1) // m) * m


def qnet_kernel(x_ref, w1_ref, b1_ref, w2_ref, b2_ref, w3_ref, b3_ref, o_ref):
    # Fully fused forward pass on one (tb, *) batch tile, resident in VMEM.
    # Matmuls: bf16 inputs, f32 accumulation (MXU-native). Elementwise: f32
    # (safe on v5e; VPU is not the bottleneck here on v6e/v7x either).
    x = x_ref[...]  # bf16
    h1 = jnp.dot(x, w1_ref[...], preferred_element_type=jnp.float32) + b1_ref[...]
    h1 = jnp.maximum(h1, 0.0)
    h2 = jnp.dot(h1.astype(jnp.bfloat16), w2_ref[...],
                 preferred_element_type=jnp.float32) + b2_ref[...]
    h2 = jnp.maximum(h2, 0.0)
    out = jnp.dot(h2.astype(jnp.bfloat16), w3_ref[...],
                  preferred_element_type=jnp.float32) + b3_ref[...]
    o_ref[...] = out.astype(o_ref.dtype)


def prepare_params(params):
    """One-time weight prep (hoisted out of the per-call hot path).

    Casts matmul weights to bf16 and zero-pads the final layer to a multiple
    of 128 output lanes so the kernel's output store is lane-dense/unmasked.
    """
    w3 = params["w3"]
    A = w3.shape[1]
    Ap = max(LANE, _round_up(A, LANE))
    return {
        "w1": params["w1"].astype(jnp.bfloat16),
        "w2": params["w2"].astype(jnp.bfloat16),
        "w3": jnp.pad(w3, ((0, 0), (0, Ap - A))).astype(jnp.bfloat16),
        "b1": params["b1"].astype(jnp.float32),
        "b2": params["b2"].astype(jnp.float32),
        "b3": jnp.pad(params["b3"], ((0, 0), (0, Ap - A))).astype(jnp.float32),
        "action_size": A,
    }


def qnetwork_forward(x, prepped, *, block_b=1024, out_dtype=jnp.float32):
    """x: (B, state_size) float32/bf16; prepped: output of prepare_params()."""
    w1, b1 = prepped["w1"], prepped["b1"]
    w2, b2 = prepped["w2"], prepped["b2"]
    w3, b3 = prepped["w3"], prepped["b3"]
    A = prepped["action_size"]

    B, S = x.shape
    H = w1.shape[1]
    Ap = w3.shape[1]

    # --- batch tiling -------------------------------------------------------
    # Clamp the tile for small batches (no more padding B=8 up to 256 rows).
    tb = min(block_b, _round_up(B, SUBLANE))
    # Keep >= 2 grid steps when the batch is big enough so the "parallel"
    # batch axis can be split across v7x's two TensorCores (megacore v5e/v6e).
    if B >= 512:
        tb = min(tb, _round_up(pl.cdiv(B, 2), SUBLANE))
    n_blocks = pl.cdiv(B, tb)
    Bp = n_blocks * tb

    # Single cast to bf16 (halves x HBM traffic); pad only when needed.
    xp = x.astype(jnp.bfloat16)
    if Bp != B:
        xp = jnp.pad(xp, ((0, Bp - B), (0, 0)))

    # Advisory cost estimate for XLA scheduling around the custom call.
    flops = 2 * Bp * (S * H + H * H + H * Ap)
    bytes_accessed = (
        Bp * S * 2                                   # x (bf16)
        + Bp * Ap * jnp.dtype(out_dtype).itemsize    # output
        + (S * H + H * H + H * Ap) * 2               # weights (bf16)
        + (H + H + Ap) * 4                           # biases (f32)
    )

    out_padded = pl.pallas_call(
        qnet_kernel,
        out_shape=jax.ShapeDtypeStruct((Bp, Ap), out_dtype),
        grid=(n_blocks,),
        in_specs=[
            # Activations: one batch tile per grid step (pipelined DMA).
            pl.BlockSpec((tb, S), lambda i: (i, 0)),
            # Weights / biases: constant index_map -> fetched once, resident
            # in VMEM across the whole grid.
            pl.BlockSpec((S, H), lambda i: (0, 0)),
            pl.BlockSpec((1, H), lambda i: (0, 0)),
            pl.BlockSpec((H, H), lambda i: (0, 0)),
            pl.BlockSpec((1, H), lambda i: (0, 0)),
            pl.BlockSpec((H, Ap), lambda i: (0, 0)),
            pl.BlockSpec((1, Ap), lambda i: (0, 0)),
        ],
        out_specs=pl.BlockSpec((tb, Ap), lambda i: (i, 0)),
        compiler_params=pltpu.CompilerParams(
            dimension_semantics=("parallel",),
        ),
        cost_estimate=pl.CostEstimate(
            flops=flops, transcendentals=0, bytes_accessed=bytes_accessed),
    )(xp, w1, b1, w2, b2, w3, b3)

    # Drop batch padding and the zero-padded action columns.
    return out_padded[:B, :A]


def init_params(key, state_size, action_size, hidden=HIDDEN):
    """Deterministic init mimicking nn.Linear's U(-1/sqrt(fan_in), 1/sqrt(fan_in))."""
    ks = jax.random.split(key, 6)

    def linear(kw, kb, fan_in, fan_out):
        bound = 1.0 / jnp.sqrt(jnp.float32(fan_in))
        w = jax.random.uniform(kw, (fan_in, fan_out), jnp.float32, -bound, bound)
        b = jax.random.uniform(kb, (1, fan_out), jnp.float32, -bound, bound)
        return w, b

    w1, b1 = linear(ks[0], ks[1], state_size, hidden)
    w2, b2 = linear(ks[2], ks[3], hidden, hidden)
    w3, b3 = linear(ks[4], ks[5], hidden, action_size)
    return {"w1": w1, "b1": b1, "w2": w2, "b2": b2, "w3": w3, "b3": b3}


def reference_forward_bf16(x, p):
    """Pure-JAX reference on the same bf16-input / f32-accum path as the kernel."""
    def mm(a, w):
        return jnp.dot(a.astype(jnp.bfloat16), w.astype(jnp.bfloat16),
                       preferred_element_type=jnp.float32)
    h1 = jnp.maximum(mm(x, p["w1"]) + p["b1"], 0.0)
    h2 = jnp.maximum(mm(h1, p["w2"]) + p["b2"], 0.0)
    return mm(h2, p["w3"]) + p["b3"]


def reference_forward_f32(x, p):
    h1 = jnp.maximum(x @ p["w1"] + p["b1"], 0.0)
    h2 = jnp.maximum(h1 @ p["w2"] + p["b2"], 0.0)
    return h2 @ p["w3"] + p["b3"]


if __name__ == "__main__":
    key = jax.random.PRNGKey(0)
    k_param, k_x = jax.random.split(key)

    batch = 8
    state_size = 16
    action_size = 4

    params = init_params(k_param, state_size, action_size)
    prepped = prepare_params(params)  # one-time: bf16 cast + lane padding
    x = jax.random.normal(k_x, (batch, state_size), jnp.float32)

    out = qnetwork_forward(x, prepped)
    out = jax.block_until_ready(out)
    assert out.shape == (batch, action_size)
    assert out.dtype == jnp.float32

    # Exact-path check (same bf16-in / f32-acc math as the kernel).
    ref_bf16 = reference_forward_bf16(x, params)
    assert jnp.allclose(out, ref_bf16, atol=1e-3, rtol=1e-3)

    # Semantics check against the full-f32 PyTorch-equivalent forward
    # (loose tolerance: matmul inputs are quantized to bf16).
    ref_f32 = reference_forward_f32(x, params)
    assert jnp.allclose(out, ref_f32, atol=1e-1, rtol=1e-1)

    # Larger-batch path: exercises multi-block grid + 2-TC split cap.
    xb = jax.random.normal(k_x, (600, state_size), jnp.float32)
    out_b = jax.block_until_ready(qnetwork_forward(xb, prepped))
    assert out_b.shape == (600, action_size)
    assert jnp.allclose(out_b, reference_forward_bf16(xb, params),
                        atol=1e-3, rtol=1e-3)

    print("KERNEL_OK")
</pallas_src>

<mosaic_0001>
module attributes {stable_mosaic.version = 11 : i64} {
  func.func @qnet_kernel(%arg0: i32, %arg1: memref<16x16xbf16, #tpu.memory_space<vmem>>, %arg2: memref<16x128xbf16, #tpu.memory_space<vmem>>, %arg3: memref<1x128xf32, #tpu.memory_space<vmem>>, %arg4: memref<128x128xbf16, #tpu.memory_space<vmem>>, %arg5: memref<1x128xf32, #tpu.memory_space<vmem>>, %arg6: memref<128x128xbf16, #tpu.memory_space<vmem>>, %arg7: memref<1x128xf32, #tpu.memory_space<vmem>>, %arg8: memref<16x128xf32, #tpu.memory_space<vmem>>) attributes {dimension_semantics = [#tpu.dimension_semantics<parallel>], iteration_bounds = array<i64: 1>, scalar_prefetch = 0 : i64, scratch_operands = 0 : i64, tpu.core_type = #tpu.core_type<tc>, window_params = [{transform_indices = @transform_0, window_bounds = array<i64: 16, 16>}, {pipeline_mode = #tpu.pipeline_mode<synchronous>, transform_indices = @transform_1, window_bounds = array<i64: 16, 128>}, {pipeline_mode = #tpu.pipeline_mode<synchronous>, transform_indices = @transform_2, window_bounds = array<i64: 1, 128>}, {pipeline_mode = #tpu.pipeline_mode<synchronous>, transform_indices = @transform_3, window_bounds = array<i64: 128, 128>}, {pipeline_mode = #tpu.pipeline_mode<synchronous>, transform_indices = @transform_4, window_bounds = array<i64: 1, 128>}, {pipeline_mode = #tpu.pipeline_mode<synchronous>, transform_indices = @transform_5, window_bounds = array<i64: 128, 128>}, {pipeline_mode = #tpu.pipeline_mode<synchronous>, transform_indices = @transform_6, window_bounds = array<i64: 1, 128>}, {transform_indices = @transform_7, window_bounds = array<i64: 16, 128>}]} {
    %c0 = arith.constant 0 : index
    %c0_0 = arith.constant 0 : index
    %0 = vector.load %arg1[%c0, %c0_0] : memref<16x16xbf16, #tpu.memory_space<vmem>>, vector<16x16xbf16>
    %c0_1 = arith.constant 0 : index
    %c0_2 = arith.constant 0 : index
    %1 = vector.load %arg2[%c0_1, %c0_2] : memref<16x128xbf16, #tpu.memory_space<vmem>>, vector<16x128xbf16>
    %cst = arith.constant dense<0.000000e+00> : vector<16x128xf32>
    %2 = tpu.matmul %0, %1, %cst {dimension_numbers = #tpu.dot_dimension_numbers<[1], [0], [0], [1], [0, 0, 1, 1], [], []>} : vector<16x16xbf16>, vector<16x128xbf16>, vector<16x128xf32> -> vector<16x128xf32>
    %c0_3 = arith.constant 0 : index
    %c0_4 = arith.constant 0 : index
    %3 = vector.load %arg3[%c0_3, %c0_4] : memref<1x128xf32, #tpu.memory_space<vmem>>, vector<1x128xf32>
    %4 = vector.broadcast %3 : vector<1x128xf32> to vector<16x128xf32>
    %5 = arith.addf %2, %4 : vector<16x128xf32>
    %cst_5 = arith.constant 0.000000e+00 : f32
    %6 = vector.broadcast %cst_5 : f32 to vector<16x128xf32>
    %7 = arith.maximumf %5, %6 : vector<16x128xf32>
    %8 = arith.truncf %7 : vector<16x128xf32> to vector<16x128xbf16>
    %c0_6 = arith.constant 0 : index
    %c0_7 = arith.constant 0 : index
    %9 = vector.load %arg4[%c0_6, %c0_7] : memref<128x128xbf16, #tpu.memory_space<vmem>>, vector<128x128xbf16>
    %cst_8 = arith.constant dense<0.000000e+00> : vector<16x128xf32>
    %10 = tpu.matmul %8, %9, %cst_8 {dimension_numbers = #tpu.dot_dimension_numbers<[1], [0], [0], [1], [0, 0, 1, 1], [], []>} : vector<16x128xbf16>, vector<128x128xbf16>, vector<16x128xf32> -> vector<16x128xf32>
    %c0_9 = arith.constant 0 : index
    %c0_10 = arith.constant 0 : index
    %11 = vector.load %arg5[%c0_9, %c0_10] : memref<1x128xf32, #tpu.memory_space<vmem>>, vector<1x128xf32>
    %12 = vector.broadcast %11 : vector<1x128xf32> to vector<16x128xf32>
    %13 = arith.addf %10, %12 : vector<16x128xf32>
    %cst_11 = arith.constant 0.000000e+00 : f32
    %14 = vector.broadcast %cst_11 : f32 to vector<16x128xf32>
    %15 = arith.maximumf %13, %14 : vector<16x128xf32>
    %16 = arith.truncf %15 : vector<16x128xf32> to vector<16x128xbf16>
    %c0_12 = arith.constant 0 : index
    %c0_13 = arith.constant 0 : index
    %17 = vector.load %arg6[%c0_12, %c0_13] : memref<128x128xbf16, #tpu.memory_space<vmem>>, vector<128x128xbf16>
    %cst_14 = arith.constant dense<0.000000e+00> : vector<16x128xf32>
    %18 = tpu.matmul %16, %17, %cst_14 {dimension_numbers = #tpu.dot_dimension_numbers<[1], [0], [0], [1], [0, 0, 1, 1], [], []>} : vector<16x128xbf16>, vector<128x128xbf16>, vector<16x128xf32> -> vector<16x128xf32>
    %c0_15 = arith.constant 0 : index
    %c0_16 = arith.constant 0 : index
    %19 = vector.load %arg7[%c0_15, %c0_16] : memref<1x128xf32, #tpu.memory_space<vmem>>, vector<1x128xf32>
    %20 = vector.broadcast %19 : vector<1x128xf32> to vector<16x128xf32>
    %21 = arith.addf %18, %20 : vector<16x128xf32>
    %c0_17 = arith.constant 0 : index
    %c0_18 = arith.constant 0 : index
    %22 = vector.load %arg8[%c0_17, %c0_18] : memref<16x128xf32, #tpu.memory_space<vmem>>, vector<16x128xf32>
    tpu.vector_store %arg8[%c0_17, %c0_18], %21 {strides = array<i32>} : memref<16x128xf32, #tpu.memory_space<vmem>>, vector<16x128xf32>,
    return
  }
  func.func @transform_0(%arg0: i32) -> (i32, i32) {
    %c0_i32 = arith.constant 0 : i32
    %c0_i32_0 = arith.constant 0 : i32
    return %arg0, %c0_i32 : i32, i32
  }
  func.func @transform_1(%arg0: i32) -> (i32, i32) {
    %c0_i32 = arith.constant 0 : i32
    %c0_i32_0 = arith.constant 0 : i32
    %c0_i32_1 = arith.constant 0 : i32
    return %c0_i32, %c0_i32_0 : i32, i32
  }
  func.func @transform_2(%arg0: i32) -> (i32, i32) {
    %c0_i32 = arith.constant 0 : i32
    %c0_i32_0 = arith.constant 0 : i32
    %c0_i32_1 = arith.constant 0 : i32
    return %c0_i32, %c0_i32_0 : i32, i32
  }
  func.func @transform_3(%arg0: i32) -> (i32, i32) {
    %c0_i32 = arith.constant 0 : i32
    %c0_i32_0 = arith.constant 0 : i32
    %c0_i32_1 = arith.constant 0 : i32
    return %c0_i32, %c0_i32_0 : i32, i32
  }
  func.func @transform_4(%arg0: i32) -> (i32, i32) {
    %c0_i32 = arith.constant 0 : i32
    %c0_i32_0 = arith.constant 0 : i32
    %c0_i32_1 = arith.constant 0 : i32
    return %c0_i32, %c0_i32_0 : i32, i32
  }
  func.func @transform_5(%arg0: i32) -> (i32, i32) {
    %c0_i32 = arith.constant 0 : i32
    %c0_i32_0 = arith.constant 0 : i32
    %c0_i32_1 = arith.constant 0 : i32
    return %c0_i32, %c0_i32_0 : i32, i32
  }
  func.func @transform_6(%arg0: i32) -> (i32, i32) {
    %c0_i32 = arith.constant 0 : i32
    %c0_i32_0 = arith.constant 0 : i32
    %c0_i32_1 = arith.constant 0 : i32
    return %c0_i32, %c0_i32_0 : i32, i32
  }
  func.func @transform_7(%arg0: i32) -> (i32, i32) {
    %c0_i32 = arith.constant 0 : i32
    %c0_i32_0 = arith.constant 0 : i32
    return %arg0, %c0_i32 : i32, i32
  }
}

</mosaic_0001>

<bundles_post_ra>
// kernel: tpu_custom_call.1
= control target key start
LH: loop header
LB: loop body
LE: loop exit
PB: predicated region body
PF: predicated region fallthrough
CT: control target
= control target key end

     0   :  { %12 = vsyncpa [#allocation3], 0  ;;  %s625_s0 = inlined_call_operand.hbm [shape: bf16[16,16], index: 0, kind: input, shape index: {}]   ;;  %s626_s1 = inlined_call_operand.hbm [shape: bf16[16,128], index: 1, kind: input, shape index: {}]   ;;  %s627_s2 = inlined_call_operand.vmem [shape: f32[1,128], index: 2, kind: input, shape index: {}]   ;;  %s628_s3 = inlined_call_operand.hbm [shape: bf16[128,128], index: 3, kind: input, shape index: {}]   ;;  %s629_s4 = inlined_call_operand.vmem [shape: f32[1,128], index: 4, kind: input, shape index: {}]   ;;  %s630_s5 = inlined_call_operand.hbm [shape: bf16[128,128], index: 5, kind: input, shape index: {}]   ;;  %s631_s6 = inlined_call_operand.vmem [shape: f32[1,128], index: 6, kind: input, shape index: {}]   ;;  %s632_s7 = inlined_call_operand.hbm [shape: f32[16,128], index: 7, kind: output, shape index: {}]  }
   0x1   :  { %13 = vsyncpa [#allocation6], 0 }
   0x2   :  { %14 = vsyncpa [#allocation9], 0 }
   0x3   :  { %15 = vsyncpa [#allocation4], 0  ;;  %s33_s26 = sshll.u32 %s626_s1, 4  ;;  %s552_s27 = smov [#allocation5]   ;;  %s34_s26 = int_to_ptr.hbm [resolvable:$true] %s33_s26 }
   0x4   :  { %s35_s28 = sshll.u32 %s552_s27, 4  ;;  %s20_s8 = sshll.u32 %s625_s0, 4  ;;  %s36_s28 = int_to_ptr.vmem [resolvable:$true] %s35_s28  ;;  %s21_s8 = int_to_ptr.hbm [resolvable:$true] %s20_s8 }
   0x5   :  { %s553_s9 = smov 64   ;;  %s554_s10 = smov 4  }
   0x6   :  { %41 = dma.hbm_to_vmem [thread:$0]  %s34_s26, 128, %s36_s28, [#allocation6], %s553_s9, %s553_s9, %s554_s10  }
   0x7   :  { %s555_s11 = smov [#allocation2]   ;;  %s48_s15 = sshll.u32 %s628_s3, 4  ;;  %s49_s15 = int_to_ptr.hbm [resolvable:$true] %s48_s15 }
   0x8   :  { %s22_s12 = sshll.u32 %s555_s11, 4  ;;  %s63_s17 = sshll.u32 %s630_s5, 4  ;;  %s23_s12 = int_to_ptr.vmem [resolvable:$true] %s22_s12  ;;  %s64_s17 = int_to_ptr.hbm [resolvable:$true] %s63_s17 }
   0x9   :  { %28 = dma.hbm_to_vmem [thread:$0]  %s21_s8, 128, %s23_s12, [#allocation3], %s553_s9, %s553_s9, %s554_s10  }
   0xa   :  { %s556_s18 = smov [#allocation7]   ;;  %s557_s0 = smov [#allocation8]  }
   0xb   :  { %s50_s19 = sshll.u32 %s556_s18, 4  ;;  %s65_s20 = sshll.u32 %s557_s0, 4  ;;  %s51_s19 = int_to_ptr.vmem [resolvable:$true] %s50_s19  ;;  %s66_s20 = int_to_ptr.vmem [resolvable:$true] %s65_s20 }
   0xc   :  { %56 = dma.hbm_to_vmem [thread:$0]  %s49_s15, 1024, %s51_s19, [#allocation6], %s553_s9, %s553_s9, %s554_s10  }
   0xd   :  { %71 = dma.hbm_to_vmem [thread:$0]  %s64_s17, 1024, %s66_s20, [#allocation9], %s553_s9, %s553_s9, %s554_s10  }
   0xe   :  { %544 = dma.done.wait [#allocation3], 128  }
   0xf   :  { %545 = vsyncadd [#allocation3], 4294967168 }
  0x10   :  { %546 = dma.done.wait [#allocation6], 1152  }
  0x11   :  { %547 = vsyncadd [#allocation6], 4294966144 }
  0x12   :  { %548 = dma.done.wait [#allocation9], 1024  }
  0x13   :  { %549 = vsyncadd [#allocation9], 4294966272  ;;  %v395_v0 = vld [vmem:[#allocation5] sm:$0xff]  ;;  %v394_v2 = vld [vmem:[#allocation2] sm:$0xff]  ;;  %vm110_vm0 = vcmask 130048   ;;  %s558_s24 = smov [#allocation10]  }
  0x14   :  { %v403_v1 = vld [vmem:[#allocation7 + $0x38] sm:$0xff]  ;;  %121 = vmatpush.bf16.msra.mxu0 %v395_v0  ;;  %v402_v3 = vld [vmem:[#allocation7 + $0x30] sm:$0xff]  ;;  %v401_v4 = vld [vmem:[#allocation7 + $0x28] sm:$0xff]  ;;  %s304_s25 = sshll.u32 %s558_s24, 4  ;;  %s559_s28 = smov 128   ;;  %s305_s25 = int_to_ptr.vmem [resolvable:$true] %s304_s25 }
  0x15   :  { %199 = vmatpush.bf16.msra.mxu1 %v403_v1  ;;  %v400_v5 = vld [vmem:[#allocation7 + $0x20] sm:$0xff]  ;;  %v399_v6 = vld [vmem:[#allocation7 + $0x18] sm:$0xff]  ;;  %v398_v7 = vld [vmem:[#allocation7 + $0x10] sm:$0xff]  ;;  %s560_s29 = smov 8  }
  0x16   :  { %v397_v8 = vld [vmem:[#allocation7 + $0x8] sm:$0xff]  ;;  %v396_v9 = vld [vmem:[#allocation7] sm:$0xff]  ;;  %v411_v10 = vld [vmem:[#allocation8 + $0x38] sm:$0xff] }
  0x17   :  { %329 = vmatmul.msk.bf16.vlgmr.msra.gmra.mxu0 %vm110_vm0, %v394_v2  ;;  %284 = vmatpush.bf16.msra.mxu2 %v411_v10  ;;  %v410_v11 = vld [vmem:[#allocation8 + $0x30] sm:$0xff]  ;;  %v409_v12 = vld [vmem:[#allocation8 + $0x28] sm:$0xff]  ;;  %v408_v13 = vld [vmem:[#allocation8 + $0x20] sm:$0xff] }
  0x18   :  { %v421_v15 = vld [vmem:[%s627_s2] ss:$0 sm:$0xff]  ;;  %v407_v22 = vld [vmem:[#allocation8 + $0x18] sm:$0xff]  ;;  %v405_v24 = vld [vmem:[#allocation8 + $0x8] sm:$0xff] }
  0x19   :  { %200 = vmatpush.bf16.msra.mxu1 %v402_v3  ;;  %v406_v23 = vld [vmem:[#allocation8 + $0x10] sm:$0xff]  ;;  %v404_v25 = vld [vmem:[#allocation8] sm:$0xff] }
  0x1a   :  { %v422_v27 = vld [vmem:[%s629_s4] ss:$0 sm:$0xff]  ;;  %s306_s4 = sshll.u32 %s632_s7, 4  ;;  %s307_s4 = int_to_ptr.hbm [resolvable:$true] %s306_s4 }
  0x1b   :  { %285 = vmatpush.bf16.msra.mxu2 %v410_v11  ;;  %v423_v34 = vld [vmem:[%s631_s6] ss:$0 sm:$0xff] }
  0x1d   :  { %201 = vmatpush.bf16.msra.mxu1 %v401_v4 }
  0x1f   :  { %286 = vmatpush.bf16.msra.mxu2 %v409_v12 }
  0x21   :  { %202 = vmatpush.bf16.msra.mxu1 %v400_v5 }
  0x23   :  { %287 = vmatpush.bf16.msra.mxu2 %v408_v13 }
  0x25   :  { %203 = vmatpush.bf16.msra.mxu1 %v399_v6 }
  0x27   :  { %288 = vmatpush.bf16.msra.mxu2 %v407_v22 }
  0x29   :  { %204 = vmatpush.bf16.msra.mxu1 %v398_v7 }
  0x2b   :  { %289 = vmatpush.bf16.msra.mxu2 %v406_v23 }
  0x2d   :  { %205 = vmatpush.bf16.msra.mxu1 %v397_v8 }
  0x2f   :  { %290 = vmatpush.bf16.msra.mxu2 %v405_v24 }
  0x31   :  { %206 = vmatpush.bf16.msra.mxu1 %v396_v9 }
  0x33   :  { %291 = vmatpush.bf16.msra.mxu2 %v404_v25 }
  0x94   :  { %v123_v14 = vpop.f32.mrf.mxu0 }
  0x95   :  { %v124_v16 = vadd.f32 %v421_v15, %v123_v14 }
  0x97   :  { %v128_v19 = vmax.f32 %v124_v16, 0.0 }
  0x9c   :  { %v125_v17 = vpop.f32.mrf.mxu0 }
  0x9d   :  { %v126_v18 = vadd.f32 %v421_v15, %v125_v17 }
  0x9f   :  { %v129_v20 = vmax.f32 %v126_v18, 0.0 }
  0xa1   :  { %v130_v21 = vpack.c.bf16 %v129_v20, %v128_v19 }
  0xa3   :  { %207 = vmatmul.bf16.vlgmr.msra.gmra.mxu1 %v130_v21 }
 0x120   :  { %v208_v26 = vpop.f32.mrf.mxu1 }
 0x121   :  { %v209_v28 = vadd.f32 %v422_v27, %v208_v26 }
 0x123   :  { %v213_v31 = vmax.f32 %v209_v28, 0.0 }
 0x128   :  { %v210_v29 = vpop.f32.mrf.mxu1 }
 0x129   :  { %v211_v30 = vadd.f32 %v422_v27, %v210_v29 }
 0x12b   :  { %v214_v32 = vmax.f32 %v211_v30, 0.0 }
 0x12d   :  { %v215_v33 = vpack.c.bf16 %v214_v32, %v213_v31 }
 0x12f   :  { %292 = vmatmul.bf16.vlgmr.msra.gmra.mxu2 %v215_v33 }
 0x1b2   :  { %v293_v35 = vpop.f32.mrf.mxu2 }
 0x1b3   :  { %v294_v36 = vadd.f32 %v423_v34, %v293_v35 }
 0x1b5   :  { %298 = vst [vmem:[#allocation10] sm:$0xff] %v294_v36 }
 0x1ba   :  { %v295_v37 = vpop.f32.mrf.mxu2 }
 0x1bb   :  { %v296_v38 = vadd.f32 %v423_v34, %v295_v37 }
 0x1bd   :  { %299 = vst [vmem:[#allocation10 + $0x8] sm:$0xff] %v296_v38 }
 0x1be   :  { %312 = dma.vmem_to_hbm [thread:$0]  %s305_s25, 256, %s307_s4, [#allocation4], %s559_s28, %s559_s28, %s560_s29  }
 0x1bf   :  { %550 = dma.done.wait [#allocation4], 256  }
 0x1c0   :  { %551 = vsyncadd [#allocation4], 4294967040 }
 0x1c1   :  { %317 = vsyncpa [#allocation3], 1 }
 0x1c2   :  { %318 = vsyncpa [#allocation6], 1 }
 0x1c3   :  { %319 = vsyncpa [#allocation9], 1 }
 0x1c4   :  { %320 = vsyncpa [#allocation4], 1 }

</bundles_post_ra>
